<compile_context>
chip_gen: v5e
topology: v5e:2x2
jax: 0.10.0
libtpu: 0.0.40
codegen_flags: <defaults>
</compile_context>

<pallas_src>
import functools
import math

import jax
import jax.numpy as jnp
from jax.experimental import pallas as pl
from jax.experimental.pallas import tpu as pltpu

_LANE = 128


def _drop_path_kernel(keep_ref, x_ref, o_ref, *, inv_keep_prob):
    # keep_ref: (B,) int32 in SMEM (scalar prefetch); 1 = keep sample, 0 = drop
    # x_ref   : (1, TS, 128) tile of sample b
    # o_ref   : (1, TS, 128)
    b = pl.program_id(0)
    scale = (keep_ref[b].astype(jnp.float32) * inv_keep_prob).astype(x_ref.dtype)
    o_ref[...] = x_ref[...] * scale


def _pick_row_tile(rows, itemsize, tile_bytes=2 << 20):
    """Rows per block: a multiple of the sublane pack (8/16/32) sized to
    ~tile_bytes, or the full row count when the sample is small."""
    sub = max(8, 32 // itemsize)                       # 8 f32, 16 bf16, 32 int8
    target = max(sub, ((tile_bytes // (_LANE * itemsize)) // sub) * sub)
    return rows if rows <= target else target


def drop_path(x, key, drop_prob=0.0, training=False):
    """Stochastic-depth forward matching the PyTorch module.

    x:   (B, ...) array (any rank >= 1)
    key: jax PRNG key used to draw the per-sample mask (glue; the heavy
         elementwise scaling runs in the Pallas kernel).
    """
    if drop_prob == 0.0 or not training:
        return x

    keep_prob = 1.0 - drop_prob
    B = x.shape[0]
    N = int(math.prod(x.shape[1:]))

    # Per-sample Bernoulli(keep_prob) keep bits, same recipe as torch:
    # floor(keep_prob + U[0,1)) in {0, 1}.
    u = jax.random.uniform(key, (B,), dtype=jnp.float32)
    keep = jnp.floor(keep_prob + u).astype(jnp.int32)              # (B,)

    # Lane- and sublane-dense layout: (B, rows, 128).
    n_pad = (-N) % _LANE
    x2 = x.reshape(B, N)
    if n_pad:
        x2 = jnp.pad(x2, ((0, 0), (0, n_pad)))
    n_padded = N + n_pad
    rows = n_padded // _LANE
    x3 = x2.reshape(B, rows, _LANE)

    itemsize = jnp.dtype(x.dtype).itemsize
    ts = _pick_row_tile(rows, itemsize)
    grid = (B, pl.cdiv(rows, ts))

    kernel = functools.partial(_drop_path_kernel,
                               inv_keep_prob=float(1.0 / keep_prob))

    out3 = pl.pallas_call(
        kernel,
        out_shape=jax.ShapeDtypeStruct((B, rows, _LANE), x.dtype),
        grid_spec=pltpu.PrefetchScalarGridSpec(
            num_scalar_prefetch=1,                                 # keep bits -> SMEM
            grid=grid,
            in_specs=[
                pl.BlockSpec((1, ts, _LANE), lambda b, t, keep: (b, t, 0)),
            ],
            out_specs=pl.BlockSpec((1, ts, _LANE), lambda b, t, keep: (b, t, 0)),
        ),
        compiler_params=pltpu.CompilerParams(
            dimension_semantics=("parallel", "parallel"),
            vmem_limit_bytes=32 * 1024 * 1024),
        input_output_aliases={1: 0},                               # out reuses x's buffer
    )(keep, x3)

    out = out3.reshape(B, n_padded)
    if n_pad:
        out = out[:, :N]
    return out.reshape(x.shape)


def _reference(x, key, drop_prob=0.0, training=False):
    # Pure-JAX reference mirroring the PyTorch module exactly (same mask draw).
    if drop_prob == 0.0 or not training:
        return x
    keep_prob = 1.0 - drop_prob
    B = x.shape[0]
    u = jax.random.uniform(key, (B,), dtype=jnp.float32)
    mask = jnp.floor(keep_prob + u).astype(x.dtype)
    shape = (B,) + (1,) * (x.ndim - 1)
    return (x / keep_prob) * mask.reshape(shape)


if __name__ == "__main__":
    key = jax.random.PRNGKey(0)
    k_x1, k_x2, k_m1, k_m2 = jax.random.split(key, 4)

    # Small deterministic inputs: a (B, C, T) tensor and a (B, C, H, W) tensor.
    x1 = jax.random.normal(k_x1, (2, 4, 16), dtype=jnp.float32)       # N = 64  (unaligned -> padded)
    x2 = jax.random.normal(k_x2, (2, 4, 16, 16), dtype=jnp.float32)   # N = 1024 (lane/sublane-dense)

    ok = True
    for x, km, p in ((x1, k_m1, 0.5), (x2, k_m2, 0.3)):
        out = drop_path(x, km, drop_prob=p, training=True)
        out = jax.block_until_ready(out)
        ref = _reference(x, km, drop_prob=p, training=True)
        ok &= bool(jnp.allclose(out, ref, atol=1e-5, rtol=1e-5))
        ok &= out.shape == x.shape and out.dtype == x.dtype
        # Eval mode and drop_prob == 0 are identity paths.
        ok &= bool(jnp.array_equal(drop_path(x, km, drop_prob=p, training=False), x))
        ok &= bool(jnp.array_equal(drop_path(x, km, drop_prob=0.0, training=True), x))

    print("KERNEL_OK" if ok else "KERNEL_MISMATCH")
</pallas_src>

<mosaic_0001>
module attributes {stable_mosaic.version = 11 : i64} {
  func.func @_drop_path_kernel(%arg0: i32, %arg1: i32, %arg2: memref<2xi32, #tpu.memory_space<smem>>, %arg3: memref<1x1x128xf32, #tpu.memory_space<vmem>>, %arg4: memref<1x1x128xf32, #tpu.memory_space<vmem>>) attributes {dimension_semantics = [#tpu.dimension_semantics<parallel>, #tpu.dimension_semantics<parallel>], iteration_bounds = array<i64: 2, 1>, scalar_prefetch = 1 : i64, scratch_operands = 0 : i64, tpu.core_type = #tpu.core_type<tc>, window_params = [{transform_indices = @transform_0, window_bounds = array<i64: 1, 1, 128>}, {transform_indices = @transform_1, window_bounds = array<i64: 1, 1, 128>}]} {
    %0 = arith.index_cast %arg0 : i32 to index
    %1 = memref.load %arg2[%0] : memref<2xi32, #tpu.memory_space<smem>>
    %2 = arith.sitofp %1 : i32 to f32
    %cst = arith.constant 2.000000e+00 : f32
    %3 = arith.mulf %2, %cst : f32
    %c0 = arith.constant 0 : index
    %c0_0 = arith.constant 0 : index
    %c0_1 = arith.constant 0 : index
    %4 = vector.load %arg3[%c0, %c0_0, %c0_1] : memref<1x1x128xf32, #tpu.memory_space<vmem>>, vector<1x1x128xf32>
    %5 = vector.broadcast %3 : f32 to vector<1x1x128xf32>
    %6 = arith.mulf %4, %5 : vector<1x1x128xf32>
    %c0_2 = arith.constant 0 : index
    %c0_3 = arith.constant 0 : index
    %c0_4 = arith.constant 0 : index
    %7 = vector.load %arg4[%c0_2, %c0_3, %c0_4] : memref<1x1x128xf32, #tpu.memory_space<vmem>>, vector<1x1x128xf32>
    tpu.vector_store %arg4[%c0_2, %c0_3, %c0_4], %6 {strides = array<i32>} : memref<1x1x128xf32, #tpu.memory_space<vmem>>, vector<1x1x128xf32>,
    return
  }
  func.func @transform_0(%arg0: i32, %arg1: i32, %arg2: memref<2xi32, #tpu.memory_space<smem>>) -> (i32, i32, i32) {
    %c0_i32 = arith.constant 0 : i32
    %c0_i32_0 = arith.constant 0 : i32
    return %arg0, %arg1, %c0_i32 : i32, i32, i32
  }
  func.func @transform_1(%arg0: i32, %arg1: i32, %arg2: memref<2xi32, #tpu.memory_space<smem>>) -> (i32, i32, i32) {
    %c0_i32 = arith.constant 0 : i32
    %c0_i32_0 = arith.constant 0 : i32
    return %arg0, %arg1, %c0_i32 : i32, i32, i32
  }
}

</mosaic_0001>

<bundles_post_ra>
// kernel: tpu_custom_call.1
= control target key start
LH: loop header
LB: loop body
LE: loop exit
PB: predicated region body
PF: predicated region fallthrough
CT: control target
= control target key end

     0   :  { %s446_s12 = smov [#allocation3]   ;;  %s587_s0 = inlined_call_operand.vmem [shape: s32[2], index: 0, kind: input, shape index: {}]   ;;  %s588_s1 = inlined_call_operand.hbm [shape: f32[2,1,128], index: 1, kind: input, shape index: {}, may-alias: {1,2}]   ;;  %s589_s2 = inlined_call_operand.hbm [shape: f32[2,1,128], index: 2, kind: output, shape index: {}, may-alias: {1,2}]  }
   0x1   :  { %s8_s11 = sshll.u32 %s587_s0, 4  ;;  %s9_s11 = int_to_ptr.vmem [resolvable:$true] %s8_s11 }
   0x2   :  { %11 = dma.vmem_to_smem %s9_s11, 16, %s446_s12, [#allocation2] }
   0x3   :  { %412 = dma.done.wait [#allocation2], 16 }
   0x4   :  { %413 = vsyncadd [#allocation2], 4294967280 }
   0x5   :  { %14 = sfence }
   0x6   :  { %15 = vsyncpa [#allocation5], 0 }
   0x7   :  { %17 = vsyncpa [#allocation5 + $0x1], 0 }
   0x8   :  { %18 = vsyncpa [#allocation6], 0 }
   0x9   :  { %20 = vsyncpa [#allocation6 + $0x1], 0  ;;  %s465_s13 = smov 0   ;;  %s467_s14 = smov 0  }
   0xa   :  { %s469_s15 = smov 0   ;;  %s471_s16 = smov 0  }
   0xb   :  { %s473_s17 = smov 0   ;;  %s475_s0 = smov 0  }
   0xc LB: > { %s248_s18 = sadd.s32 4294967295, %s444_s0   ;;  %s249_s19 = sadd.s32 4294967294, %s444_s0   ;;  %s444_s0 = sphi %s475_s0, %s26_s0   ;;  %s440_s17 = sphi %s473_s17, %s598_s17   ;;  %s436_s16 = sphi %s471_s16, %s597_s16   ;;  %s432_s15 = sphi %s469_s15, %s596_s15   ;;  %s428_s14 = sphi %s467_s14, %s595_s14   ;;  %s424_s13 = sphi %s465_s13, %s594_s13  }
   0xd   : > { %s38_s20 = sadd.s32 1, %s440_s17  ;;  %s47_s21 = sadd.s32 1, %s432_s15 }
   0xe   : > { %p40_p0 = scmp.ge.s32.totalorder %s38_s20, 2  ;;  %p54_p1 = scmp.ne.s32.totalorder %s432_s15, %s428_s14 }
   0xf   : > { %p55_p2 = scmp.eq.s32.totalorder %s444_s0, 0  ;;  %p60_p3 = scmp.ne.s32.totalorder %s428_s14, %s424_s13 }
  0x10   : > { %s600_s20 = smov (%p40_p0, %s38_s20), 0  ;;  %p61_p5 = scmp.eq.s32.totalorder %s248_s18, 0 }
  0x11   : > { %p506_p4 = por %p55_p2, %p54_p1  ;;  %s42_s23 = ssub.s32 %s440_s17, %s600_s20 }
  0x12   : > { %p86_p6 = scmp.eq.s32.totalorder %s248_s18, 1  ;;  %p45_p7 = scmp.eq.s32.totalorder %s42_s23, 0 }
  0x13   : > { %p512_p8 = por %p61_p5, %p60_p3  ;;  %p92_p10 = scmp.eq.s32.totalorder %s249_s19, 1 }
  0x14   : > { %p516_p9 = por %p86_p6, %p54_p1  ;;  %p251_p12 = scmp.ge.s32.totalorder %s444_s0, 2 }
  0x15   : > { %s521_s26 = scalar_select %p45_p7, %s432_s15, %s47_s21  }
  0x16   : > { %p523_p11 = por %p92_p10, %p60_p3  ;;  %p267_p13 = scmp.lt.s32.totalorder %s444_s0, 2 }
  0x17   : > { %s112_s28 = sand.u32 1, %s432_s15   ;;  %s119_s3 = scalar_lea.hbm %s588_s1, %s440_s17 }
  0x18   : > { %s115_s4 = scalar_lea.vmem [#allocation4], %s112_s28  ;;  %s121_s6 = sshll.u32 %s119_s3, 4  ;;  %s122_s6 = int_to_ptr.hbm [resolvable:$true] %s121_s6 }
  0x19   : > { %s123_s5 = sshll.u32 %s115_s4, 4  ;;  %p260_p0 = pnand %p267_p13, %p506_p4  ;;  %s124_s5 = int_to_ptr.vmem [resolvable:$true] %s123_s5 }
  0x1a   : > { %p252_p1 = scmp.ge.s32.totalorder %s444_s0, 1  ;;  %p128_p2 = scmp.lt.s32.totalorder %s444_s0, 3 }
  0x1b   : > { %s113_s7 = scalar_lea.sflag [#allocation5], %s112_s28 }
  0x1c   : > { %262 = dma.hbm_to_vmem [thread:$0]  (!%p260_p0), %s122_s6, 16, %s124_s5, %s113_s7  }
  0x1d   : > { %p129_p3 = pnand %p252_p1, %p128_p2 }
  0x1e   : > { %s539_s8 = sand.u32 (!%p129_p3), 1, %s428_s14  }
  0x1f   : > { %132 = sbr.rel (%p129_p3) target bundleno = 53 (0x35), region = 24  ;;  %s135_s9 = scalar_lea.sflag (!%p129_p3), [#allocation5], %s539_s8 }
  0x20   : > { %s137_s10 = scalar_lea.vmem (!%p129_p3), [#allocation4], %s539_s8 }
  0x24   : > { %415 = dma.done.wait (%p512_p8), %s135_s9, 16  }
  0x25   : > { %417 = vsyncadd (%p512_p8), %s135_s9, 4294967280  ;;  %s155_s11 = sld [smem:[#allocation3 + %s436_s16]]  ;;  %s172_s19 = scalar_lea.hbm %s589_s2, %s436_s16  ;;  %v158_v0 = vld [vmem:[%s137_s10] sm:$0x1] }
  0x26   : > { %s154_s22 = scalar_lea.vmem [#allocation7], %s539_s8  ;;  %s176_s29 = sshll.u32 %s172_s19, 4  ;;  %s177_s29 = int_to_ptr.hbm [resolvable:$true] %s176_s29 }
  0x27   : > { %s174_s23 = sshll.u32 %s154_s22, 4  ;;  %s163_s24 = scalar_lea.sflag [#allocation6], %s539_s8  ;;  %s175_s23 = int_to_ptr.vmem [resolvable:$true] %s174_s23 }
  0x28   : > { %s374_s30 = sshra.s32 %s177_s29, 4  ;;  %s380_s5 = scalar_lea.hbm %s589_s2, 2  ;;  %s375_s30 = int_to_ptr.hbm [resolvable:$true] %s374_s30 }
  0x29   : > { %s376_s3 = scalar_lea.hbm %s375_s30, 1  ;;  %p381_p7 = scmp.lt.s32.totalorder %s375_s30, %s589_s2 }
  0x2a   : > { %p377_p4 = scmp.ne.s32.totalorder %s375_s30, %s376_s3  ;;  %p382_p8 = scmp.lt.s32.totalorder %s380_s5, %s376_s3 }
  0x2b   : > { %s156_s21 = scvt.s32.f32 %s155_s11 }
  0x2c   : > { %p378_p5 = pnand %p377_p4, %p516_p9  ;;  %p383_p10 = por %p382_p8, %p381_p7 }
  0x2d   : > { %s157_s28 = smul.f32 2.0, %s156_s21 }
  0x2e   : > { %p379_p6 = pneg %p378_p5 }
  0x2f   : > { %v159_v1 = vstv %s157_s28 }
  0x30   : > { %v160_v2 = vmul.f32 %v159_v1, %v158_v0  ;;  %p384_p13 = pnand %p383_p10, %p379_p6 }
  0x32   : > { %161 = vst [vmem:[%s154_s22] sm:$0x1] %v160_v2 }
  0x33   : > { %387 = shalt.err (!%p384_p13)
}
  0x34   : > { %257 = dma.vmem_to_hbm [thread:$0]  (%p516_p9), %s175_s23, 16, %s177_s29, %s163_s24  }
  0x35 PF: > { %s188_s8 = sand.u32 1, %s424_s13   ;;  %p264_p0 = pnand %p251_p12, %p523_p11 }
  0x36   : > { %s189_s9 = scalar_lea.sflag [#allocation6], %s188_s8 }
  0x37   : > { %p265_p1 = pneg %p264_p0 }
  0x39   : > { %419 = dma.done.wait (%p265_p1), %s189_s9, 16  }
  0x3a   : > { %421 = vsyncadd (%p265_p1), %s189_s9, 4294967280  ;;  %s26_s0 = sadd.s32 1, %s444_s0   ;;  %s594_s13 = smov %s428_s14 }
  0x3b   : > { %p23_p2 = scmp.ge.s32.totalorder %s26_s0, 4   ;;  %s595_s14 = smov %s432_s15 }
  0x3c   : > { %s596_s15 = smov %s521_s26  ;;  %s597_s16 = smov %s440_s17 }
  0x3d   : > { %s598_s17 = smov %s600_s20  ;;  %25 = sbr.rel (!%p23_p2) target bundleno = 12 (0xc), region = 69 }
  0x42   :  { %194 = vsyncpa [#allocation5], 1 }
  0x43   :  { %196 = vsyncpa [#allocation5 + $0x1], 1 }
  0x44   :  { %197 = vsyncpa [#allocation6], 1 }
  0x45   :  { %199 = vsyncpa [#allocation6 + $0x1], 1 }

</bundles_post_ra>
